<compile_context>
chip_gen: v7x
topology: tpu7x:2x2x1
jax: 0.10.0
libtpu: 0.0.40
codegen_flags: <defaults>
</compile_context>

<pallas_src>
import functools

import jax
import jax.numpy as jnp
from jax.experimental import pallas as pl
from jax.experimental.pallas import tpu as pltpu


def _round_up(x, m):
    return ((x + m - 1) // m) * m


# ---------------------------------------------------------------------------
# Kernel: one row-tile -> one lane-dense partial sum block.
# ---------------------------------------------------------------------------
def _gan_loss_kernel(prob_ref, target_ref, reward_ref, out_ref, *, n_rows, block_rows):
    i = pl.program_id(0)
    prob = prob_ref[...]                        # (BN, C)  native dtype
    tgt = target_ref[...]                       # (BN, 1)  int32
    rew = reward_ref[...].astype(jnp.float32)   # (BN, 1)  f32

    bn, c = prob.shape
    row0 = i * block_rows
    row = jax.lax.broadcasted_iota(jnp.int32, (bn, c), 0) + row0
    col = jax.lax.broadcasted_iota(jnp.int32, (bn, c), 1)

    # prob[r, target[r]] via masked select (replaces torch scatter_/masked_select).
    # jnp.where (not one_hot * prob) so -inf entries in prob never produce NaN,
    # and out-of-range rows of a partial last tile contribute exactly 0.
    mask = (col == tgt) & (row < n_rows)
    selected = jnp.sum(jnp.where(mask, prob, 0), axis=1, keepdims=True)   # (BN, 1)
    selected = selected.astype(jnp.float32)

    row1 = jax.lax.broadcasted_iota(jnp.int32, (bn, 1), 0) + row0
    rew = jnp.where(row1 < n_rows, rew, 0.0)     # zero garbage rewards in padded rows

    tile_sum = jnp.sum(selected * rew)           # f32 partial (unnegated)
    # Lane-dense unmasked store of the partial (broadcast scalar over (1, 8, 128)).
    out_ref[...] = jnp.broadcast_to(tile_sum, out_ref.shape)


# ---------------------------------------------------------------------------
# Wrapper: tiling, specs, final tiny reduction over per-tile partials.
# ---------------------------------------------------------------------------
def gan_loss(prob, target, reward, *, block_rows=None):
    """prob: (N, C) float, target: (N,) int, reward: (N,) float -> scalar loss."""
    N, C = prob.shape
    itemsize = jnp.dtype(prob.dtype).itemsize
    # sublane alignment: f32 -> 8, bf16 -> 16, int8/fp8 -> 32
    row_align = {4: 8, 2: 16, 1: 32}.get(itemsize, 8)

    if block_rows is None:
        # ~4 MiB prob tile per buffer (x2 double-buffering ~ 8 MiB): comfortably
        # under scoped-VMEM defaults on v5e/v6e and v7x's 64 MiB physical VMEM.
        budget = 4 * 1024 * 1024
        bn = (budget // max(1, C * itemsize)) // row_align * row_align
        bn = max(row_align, min(bn, 512))
    else:
        bn = max(row_align, _round_up(block_rows, row_align))
    if N <= bn:
        bn = N  # single full-extent block (full array dims are always legal)

    num_tiles = pl.cdiv(N, bn)

    t2 = target.reshape(N, 1).astype(jnp.int32)
    r2 = reward.reshape(N, 1).astype(jnp.float32)

    kernel = functools.partial(_gan_loss_kernel, n_rows=N, block_rows=bn)

    bytes_accessed = N * C * itemsize + N * (4 + 4) + num_tiles * 8 * 128 * 4

    partials = pl.pallas_call(
        kernel,
        out_shape=jax.ShapeDtypeStruct((num_tiles, 8, 128), jnp.float32),
        grid=(num_tiles,),
        in_specs=[
            pl.BlockSpec((bn, C), lambda i: (i, 0)),   # prob tile, native dtype
            pl.BlockSpec((bn, 1), lambda i: (i, 0)),   # target tile
            pl.BlockSpec((bn, 1), lambda i: (i, 0)),   # reward tile
        ],
        out_specs=pl.BlockSpec((1, 8, 128), lambda i: (i, 0, 0)),
        compiler_params=pltpu.CompilerParams(
            dimension_semantics=("parallel",),          # independent tiles -> megacore OK
            vmem_limit_bytes=32 * 1024 * 1024,
        ),
        cost_estimate=pl.CostEstimate(
            flops=2 * N * C,
            transcendentals=0,
            bytes_accessed=bytes_accessed,
        ),
    )(prob, t2, r2)

    # Each (8,128) block holds the same broadcast partial; pick one lane per tile.
    return -jnp.sum(partials[:, 0, 0])


# ---------------------------------------------------------------------------
# Pure-JAX reference (mirrors the PyTorch forward exactly).
# ---------------------------------------------------------------------------
def reference_gan_loss(prob, target, reward):
    sel = jnp.take_along_axis(
        prob.astype(jnp.float32), target[:, None].astype(jnp.int32), axis=1
    )[:, 0]
    return -jnp.sum(sel * reward.astype(jnp.float32))


if __name__ == "__main__":
    # Shapes consistent with the module: prob (N, C), target (N,), reward (N,)
    N, C = 8, 16

    key = jax.random.PRNGKey(0)
    k_logits, k_tgt, k_rew = jax.random.split(key, 3)

    logits = jax.random.normal(k_logits, (N, C), jnp.float32)
    prob = jax.nn.log_softmax(logits, axis=1)              # typical generator output
    target = jax.random.randint(k_tgt, (N,), 0, C, dtype=jnp.int32)
    reward = jax.random.uniform(k_rew, (N,), jnp.float32)

    loss = gan_loss(prob, target, reward)
    jax.block_until_ready(loss)

    ref = reference_gan_loss(prob, target, reward)
    assert loss.shape == ()
    assert jnp.allclose(loss, ref, atol=1e-5, rtol=1e-5)

    # Exercise the multi-tile + masked partial-last-tile path at a second small shape.
    N2, C2 = 20, 24
    k1, k2, k3 = jax.random.split(jax.random.PRNGKey(0), 3)
    prob2 = jax.nn.log_softmax(jax.random.normal(k1, (N2, C2), jnp.float32), axis=1)
    target2 = jax.random.randint(k2, (N2,), 0, C2, dtype=jnp.int32)
    reward2 = jax.random.uniform(k3, (N2,), jnp.float32)
    loss2 = gan_loss(prob2, target2, reward2, block_rows=8)   # 3 tiles, last one padded
    jax.block_until_ready(loss2)
    assert jnp.allclose(loss2, reference_gan_loss(prob2, target2, reward2),
                        atol=1e-5, rtol=1e-5)

    print("KERNEL_OK")
</pallas_src>

<mosaic_0001>
module attributes {stable_mosaic.version = 11 : i64} {
  func.func @_gan_loss_kernel(%arg0: i32, %arg1: memref<8x16xf32, #tpu.memory_space<vmem>>, %arg2: memref<8x1xi32, #tpu.memory_space<vmem>>, %arg3: memref<8x1xf32, #tpu.memory_space<vmem>>, %arg4: memref<1x8x128xf32, #tpu.memory_space<vmem>>) attributes {dimension_semantics = [#tpu.dimension_semantics<parallel>], iteration_bounds = array<i64: 1>, scalar_prefetch = 0 : i64, scratch_operands = 0 : i64, tpu.core_type = #tpu.core_type<tc>, window_params = [{transform_indices = @transform_0, window_bounds = array<i64: 8, 16>}, {transform_indices = @transform_1, window_bounds = array<i64: 8, 1>}, {transform_indices = @transform_2, window_bounds = array<i64: 8, 1>}, {transform_indices = @transform_3, window_bounds = array<i64: 1, 8, 128>}]} {
    %c0 = arith.constant 0 : index
    %c0_0 = arith.constant 0 : index
    %0 = vector.load %arg1[%c0, %c0_0] : memref<8x16xf32, #tpu.memory_space<vmem>>, vector<8x16xf32>
    %c0_1 = arith.constant 0 : index
    %c0_2 = arith.constant 0 : index
    %1 = vector.load %arg2[%c0_1, %c0_2] : memref<8x1xi32, #tpu.memory_space<vmem>>, vector<8x1xi32>
    %c0_3 = arith.constant 0 : index
    %c0_4 = arith.constant 0 : index
    %2 = vector.load %arg3[%c0_3, %c0_4] : memref<8x1xf32, #tpu.memory_space<vmem>>, vector<8x1xf32>
    %c8_i32 = arith.constant 8 : i32
    %3 = arith.muli %arg0, %c8_i32 : i32
    %4 = tpu.iota {dimensions = array<i32: 0>} : vector<8x16xi32>
    %5 = vector.broadcast %3 : i32 to vector<8x16xi32>
    %6 = arith.addi %4, %5 : vector<8x16xi32>
    %7 = tpu.iota {dimensions = array<i32: 1>} : vector<8x16xi32>
    %8 = vector.broadcast %1 : vector<8x1xi32> to vector<8x16xi32>
    %9 = arith.cmpi eq, %7, %8 : vector<8x16xi32>
    %c8_i32_5 = arith.constant 8 : i32
    %10 = vector.broadcast %c8_i32_5 : i32 to vector<8x16xi32>
    %11 = arith.cmpi slt, %6, %10 : vector<8x16xi32>
    %12 = arith.andi %9, %11 : vector<8x16xi1>
    %c0_i32 = arith.constant 0 : i32
    %13 = arith.sitofp %c0_i32 : i32 to f32
    %14 = vector.broadcast %13 : f32 to vector<8x16xf32>
    %15 = arith.select %12, %0, %14 : vector<8x16xi1>, vector<8x16xf32>
    %cst = arith.constant dense<0.000000e+00> : vector<8xf32>
    %16 = vector.multi_reduction <add>, %15, %cst [1] : vector<8x16xf32> to vector<8xf32>
    %17 = vector.shape_cast %16 : vector<8xf32> to vector<8x1xf32>
    %18 = tpu.iota {dimensions = array<i32: 0>} : vector<8x1xi32>
    %19 = vector.broadcast %3 : i32 to vector<8x1xi32>
    %20 = arith.addi %18, %19 : vector<8x1xi32>
    %c8_i32_6 = arith.constant 8 : i32
    %21 = vector.broadcast %c8_i32_6 : i32 to vector<8x1xi32>
    %22 = arith.cmpi slt, %20, %21 : vector<8x1xi32>
    %cst_7 = arith.constant 0.000000e+00 : f32
    %23 = vector.broadcast %cst_7 : f32 to vector<8x1xf32>
    %24 = arith.select %22, %2, %23 : vector<8x1xi1>, vector<8x1xf32>
    %25 = arith.mulf %17, %24 : vector<8x1xf32>
    %26 = vector.shape_cast %25 : vector<8x1xf32> to vector<1x8x1xf32>
    %cst_8 = arith.constant dense<0.000000e+00> : vector<1xf32>
    %27 = vector.multi_reduction <add>, %26, %cst_8 [1, 2] : vector<1x8x1xf32> to vector<1xf32>
    %28 = vector.shape_cast %27 : vector<1xf32> to vector<1x1x1xf32>
    %29 = vector.extract %28[0, 0, 0] : f32 from vector<1x1x1xf32>
    %30 = vector.broadcast %29 : f32 to vector<1x8x128xf32>
    %c0_9 = arith.constant 0 : index
    %c0_10 = arith.constant 0 : index
    %c0_11 = arith.constant 0 : index
    %31 = vector.load %arg4[%c0_9, %c0_10, %c0_11] : memref<1x8x128xf32, #tpu.memory_space<vmem>>, vector<1x8x128xf32>
    tpu.vector_store %arg4[%c0_9, %c0_10, %c0_11], %30 {strides = array<i32>} : memref<1x8x128xf32, #tpu.memory_space<vmem>>, vector<1x8x128xf32>,
    return
  }
  func.func @transform_0(%arg0: i32) -> (i32, i32) {
    %c0_i32 = arith.constant 0 : i32
    %c0_i32_0 = arith.constant 0 : i32
    return %arg0, %c0_i32 : i32, i32
  }
  func.func @transform_1(%arg0: i32) -> (i32, i32) {
    %c0_i32 = arith.constant 0 : i32
    %c0_i32_0 = arith.constant 0 : i32
    return %arg0, %c0_i32 : i32, i32
  }
  func.func @transform_2(%arg0: i32) -> (i32, i32) {
    %c0_i32 = arith.constant 0 : i32
    %c0_i32_0 = arith.constant 0 : i32
    return %arg0, %c0_i32 : i32, i32
  }
  func.func @transform_3(%arg0: i32) -> (i32, i32, i32) {
    %c0_i32 = arith.constant 0 : i32
    %c0_i32_0 = arith.constant 0 : i32
    %c0_i32_1 = arith.constant 0 : i32
    return %arg0, %c0_i32, %c0_i32_0 : i32, i32, i32
  }
}

</mosaic_0001>

<bundles_post_ra>
// kernel: tpu_custom_call.1
= control target key start
LH: loop header
LB: loop body
LE: loop exit
PB: predicated region body
PF: predicated region fallthrough
CT: control target
= control target key end

     0   :  { %s137_s0 = inlined_call_operand.vmem [shape: f32[8,16], index: 0, kind: input, shape index: {}]   ;;  %s138_s1 = inlined_call_operand.vmem [shape: s32[8,1], index: 1, kind: input, shape index: {}]   ;;  %s139_s2 = inlined_call_operand.vmem [shape: f32[8,1], index: 2, kind: input, shape index: {}]   ;;  %s140_s3 = inlined_call_operand.hbm [shape: f32[1,8,128], index: 3, kind: output, shape index: {}]  }
   0x1   :  { %v16_v0 = vld [vmem:[%s138_s1] sm:$0xff] }
   0x2   :  { %8 = vsyncpa [#allocation3], 0  ;;  %v94_v1 = vmov 0   ;;  %v23_v2 = vlaneseq  ;;  %v15_v4 = vld [vmem:[%s137_s0] sm:$0xff]  ;;  %vm32_vm0 = vcmask 130048   ;;  %vm38_vm2 = vcmask 7168  }
   0x3   :  { %69 = vset.pattern.permute.xlu0 %v94_v1  ;;  %v17_v8 = vld [vmem:[%s139_s2] sm:$0xff]  ;;  %s95_s0 = smov [#allocation2]  }
   0x4   :  { %26 = vperm.xlu0 %69, %v16_v0   ;;  %v24_v3 = vand.u32 127, %v23_v2  ;;  %s57_s1 = sshll.u32 %s95_s0, 4  ;;  %s58_s1 = int_to_ptr.vmem [resolvable:$true] %s57_s1 }
   0x5   :  { %s70_s2 = scalar_lea.vmem %s58_s1, 128  ;;  %p75_p1 = scmp.lt.s32.totalorder %s58_s1, %s58_s1 }
   0x6   :  { %p71_p0 = scmp.ne.s32.totalorder %s58_s1, %s70_s2  ;;  %p76_p2 = scmp.lt.s32.totalorder %s70_s2, %s70_s2 }
   0x8   :  { %p77_p3 = por %p76_p2, %p75_p1 }
   0xa   :  { %p78_p4 = pnand %p77_p3, %p71_p0 }
  0x83   :  { %v27_v5 = vpop.permute.xlu0 %26 }
  0x84   :  { %vm28_vm1 = vcmp.eq.s32.totalorder %v24_v3, %v27_v5 }
  0x85   :  { %v31_v6 = vsel %vm28_vm1, %v15_v4, 0.0 }
  0x86   :  { %v33_v7 = vsel %vm32_vm0, %v31_v6, 0.0 }
  0x87   :  { %34 = vadd.xlane.f32.xlu0 %v33_v7 }
 0x114   :  { %v35_v9 = vpop.xlane.xlu0 %34 }
 0x115   :  { %v37_v10 = vmul.f32 %v35_v9, %v17_v8 }
 0x117   :  { %v39_v11 = vsel %vm38_vm2, %v37_v10, 0.0 }
 0x118   :  { %40 = vadd.xlane.f32.xlu1 %v39_v11 }
 0x1a5   :  { %v41_v12 = vpop.xlane.xlu1 %40 }
 0x1a6   :  { %v42_v13 = vrot.slane %v41_v12, 4 }
 0x1a8   :  { %v43_v14 = vadd.f32 %v42_v13, %v41_v12 }
 0x1aa   :  { %v44_v15 = vrot.slane %v43_v14, 2 }
 0x1ac   :  { %v45_v16 = vadd.f32 %v44_v15, %v43_v14 }
 0x1ae   :  { %v46_v17 = vrot.slane %v45_v16, 1 }
 0x1b0   :  { %v47_v18 = vadd.f32 %v46_v17, %v45_v16 }
 0x1b2   :  { %65 = vpush %v47_v18 }
 0x1e3   :  { %s66_s18 = spop %65 }
 0x1e4   :  { %v49_v19 = vstv %s66_s18 }
 0x1e5   :  { %50 = vst [vmem:[#allocation2] sm:$0xff] %v49_v19 }
 0x1e6   :  { %81 = shalt.err (!%p78_p4)
}
 0x1e7   :  { %s82_s21 = scalar_lea.hbm %s140_s3, 128 }
 0x1e8   :  { %p83_p5 = scmp.ne.s32.totalorder %s140_s3, %s82_s21  ;;  %p86_p6 = scmp.lt.u32.totalorder %s82_s21, %s140_s3 }
 0x1ea   :  { %p88_p7 = pnand %p86_p6, %p83_p5 }
 0x1ec   :  { %91 = shalt.err (!%p88_p7)
}
 0x1ed   :  { %60 = dma.vmem_to_hbm [thread:$0]  %s58_s1, 128, %s140_s3, [#allocation3]  }
 0x1ee   :  { %92 = dma.done.wait [#allocation3], 128  }
 0x1ef   :  { %93 = vsyncadd [#allocation3], 4294967168 }
 0x1f0   :  { %64 = vsyncpa [#allocation3], 1 }

</bundles_post_ra>
